<compile_context>
chip_gen: v5e
topology: v5e:2x2
jax: 0.10.0
libtpu: 0.0.40
codegen_flags: <defaults>
</compile_context>

<pallas_src>
import functools

import jax
import jax.numpy as jnp
from jax.experimental import pallas as pl
from jax.experimental.pallas import tpu as pltpu


def _linear_kernel(x_ref, wt_ref, b_ref, o_ref):
    # x_ref:  (TM, K)    activations tile, K a multiple of 128
    # wt_ref: (K, 256)   transposed weight (constant index_map -> VMEM resident)
    # b_ref:  (1, 256)   f32 bias
    # o_ref:  (TM, 256)  output tile (lane-dense)
    acc = jnp.dot(x_ref[...], wt_ref[...], preferred_element_type=jnp.float32)
    o_ref[...] = (acc + b_ref[...]).astype(o_ref.dtype)


def _linear_padk_kernel(K, x_ref, wt_ref, b_ref, o_ref, xpad_ref):
    # Same as above, but K (=263) is not lane-aligned.  X stays un-padded in
    # HBM; it is zero-extended to Kp (=384) in a VMEM scratch so the MXU sees a
    # clean (TM, Kp) @ (Kp, 256).  The scratch is re-zeroed every grid step
    # (trivial VMEM-store traffic, hidden under the HBM-bound input DMA) so it
    # stays correct under megacore grid sharding, where program_id(0) == 0 is
    # not guaranteed to run on every core.
    xpad_ref[...] = jnp.zeros_like(xpad_ref)
    xpad_ref[:, :K] = x_ref[...]
    acc = jnp.dot(xpad_ref[...], wt_ref[...], preferred_element_type=jnp.float32)
    o_ref[...] = (acc + b_ref[...]).astype(o_ref.dtype)


def panels_to_embeddings(x, weight, bias, *, tag=False, tm=2048):
    """Pallas implementation of PanelsToEmbeddings.forward.

    x      : any shape flattening to rows of length in_dim (e.g. (B, P, in_dim));
             f32 or bf16 (bf16 is used as-is, never created by a wrapper cast).
    weight : (256, in_dim)  -- PyTorch nn.Linear layout (out, in)
    bias   : (256,)
    tag    : if True, in_dim = 263.
    tm     : row-tile cap in f32-equivalent rows (doubled for 16-bit dtypes).
    returns: (N, 256) in x.dtype, with N = x.size // in_dim.
    """
    in_dim = 256 + (7 if tag else 0)
    out_dim = 256

    x2 = x.reshape(-1, in_dim)           # == torch x.view(-1, in_dim); no copy
    N = x2.shape[0]
    xdt = x2.dtype
    x_bytes = jnp.dtype(xdt).itemsize

    # --- weight: transpose (and, for K=263, zero-pad to Kp=384) -------------
    # Only the tiny weight is touched here; X is never padded or copied.
    # TODO(synk): store the parameter pre-transposed / pre-padded as (Kp, 256)
    # to drop even this small per-call transpose.
    K = in_dim
    Kp = ((K + 127) // 128) * 128
    w_t = jnp.transpose(weight)
    if Kp != K:
        w_t = jnp.pad(w_t, ((0, Kp - K), (0, 0)))
    if x_bytes < 4:
        w_t = w_t.astype(xdt)            # match MXU operand dtype (weight is tiny)
    b2 = bias.reshape(1, out_dim).astype(jnp.float32)

    # --- row tiling ----------------------------------------------------------
    # sublane granularity: 8 rows (32-bit), 16 rows (16-bit), 32 rows (8-bit)
    sublane = 8 if x_bytes >= 4 else (16 if x_bytes == 2 else 32)
    tm_cap = max(sublane, int(tm) * (4 // max(1, x_bytes)))
    # >= 2 grid steps only when N is large enough that each v7x TensorCore gets
    # a sizeable tile; v5e/v6e have a single TC and small N runs as one step.
    min_steps = 2 if N >= 2048 else 1
    steps = max(min_steps, pl.cdiv(N, tm_cap))
    tm_eff = ((pl.cdiv(N, steps) + sublane - 1) // sublane) * sublane
    grid_m = pl.cdiv(N, tm_eff)
    # grid_m * tm_eff may exceed N: Pallas masks the ragged last block (OOB
    # output rows are dropped; their garbage inputs affect nothing else).

    needs_kpad = Kp != K
    if needs_kpad:
        kernel = functools.partial(_linear_padk_kernel, K)
        scratch_shapes = [pltpu.VMEM((tm_eff, Kp), xdt)]
    else:
        kernel = _linear_kernel
        scratch_shapes = []

    # --- VMEM budget: double-buffered x/out + resident weight/bias + scratch -
    w_bytes = jnp.dtype(w_t.dtype).itemsize
    vmem_need = (2 * tm_eff * K * x_bytes
                 + 2 * tm_eff * out_dim * x_bytes
                 + 2 * (Kp * out_dim * w_bytes + out_dim * 4))
    if needs_kpad:
        vmem_need += tm_eff * Kp * x_bytes
    vmem_limit = min(56 * 1024 * 1024, max(32 * 1024 * 1024, int(1.5 * vmem_need)))

    cost = pl.CostEstimate(
        flops=2 * N * K * out_dim,
        transcendentals=0,
        bytes_accessed=(N * K * x_bytes                 # X read (un-padded)
                        + Kp * out_dim * w_bytes        # resident weight
                        + out_dim * 4                   # bias
                        + N * out_dim * x_bytes),       # Y write
    )

    y = pl.pallas_call(
        kernel,
        out_shape=jax.ShapeDtypeStruct((N, out_dim), xdt),
        grid_spec=pltpu.PrefetchScalarGridSpec(
            num_scalar_prefetch=0,
            grid=(grid_m,),
            in_specs=[
                # X: full-K block (last block dim == full array dim, so K=263
                # needs no lane padding in HBM); rows tiled by tm_eff.
                pl.BlockSpec((tm_eff, K), lambda i: (i, 0)),
                pl.BlockSpec((Kp, out_dim), lambda i: (0, 0)),   # resident weight
                pl.BlockSpec((1, out_dim), lambda i: (0, 0)),    # resident bias
            ],
            out_specs=pl.BlockSpec((tm_eff, out_dim), lambda i: (i, 0)),
            scratch_shapes=scratch_shapes,
        ),
        compiler_params=pltpu.CompilerParams(
            dimension_semantics=("parallel",),
            vmem_limit_bytes=vmem_limit,
        ),
        cost_estimate=cost,
    )(x2, w_t, b2)
    return y


if __name__ == "__main__":
    key = jax.random.PRNGKey(0)
    out_dim = 256
    batch, num_panels = 2, 8          # small WReN-consistent shapes -> N = 16 rows
    ok = True

    for tag in (False, True):
        in_dim = 256 + (7 if tag else 0)
        key, kx, kw, kb = jax.random.split(key, 4)

        # Deterministic parameter init (same bound scheme as nn.Linear).
        bound = 1.0 / (in_dim ** 0.5)
        weight = jax.random.uniform(kw, (out_dim, in_dim), jnp.float32, -bound, bound)
        bias = jax.random.uniform(kb, (out_dim,), jnp.float32, -bound, bound)
        x = jax.random.normal(kx, (batch, num_panels, in_dim), jnp.float32)

        # Reference (plain JAX, same math as torch nn.Linear on x.view(-1, in_dim)).
        y_ref = x.reshape(-1, in_dim) @ weight.T + bias

        # f32 path (exact check).
        y = jax.block_until_ready(panels_to_embeddings(x, weight, bias, tag=tag))
        ok &= (y.shape == (batch * num_panels, out_dim))
        ok &= bool(jnp.allclose(y, y_ref, atol=1e-4, rtol=1e-4))

        # bf16 path: activations already bf16 in HBM (no wrapper-side cast of
        # f32 data inside the op); output stays bf16, accumulation is f32.
        x_bf = x.astype(jnp.bfloat16)
        y_bf = jax.block_until_ready(panels_to_embeddings(x_bf, weight, bias, tag=tag))
        y_bf_ref = x_bf.astype(jnp.float32).reshape(-1, in_dim) @ weight.T + bias
        ok &= (y_bf.shape == (batch * num_panels, out_dim))
        ok &= bool(jnp.allclose(y_bf.astype(jnp.float32), y_bf_ref,
                                atol=5e-2, rtol=5e-2))

    assert ok
    print("KERNEL_OK")
</pallas_src>

<mosaic_0001>
module attributes {stable_mosaic.version = 11 : i64} {
  func.func @_linear_kernel(%arg0: i32, %arg1: memref<16x256xf32, #tpu.memory_space<vmem>>, %arg2: memref<256x256xf32, #tpu.memory_space<vmem>>, %arg3: memref<1x256xf32, #tpu.memory_space<vmem>>, %arg4: memref<16x256xf32, #tpu.memory_space<vmem>>) attributes {dimension_semantics = [#tpu.dimension_semantics<parallel>], iteration_bounds = array<i64: 1>, scalar_prefetch = 0 : i64, scratch_operands = 0 : i64, tpu.core_type = #tpu.core_type<tc>, window_params = [{transform_indices = @transform_0, window_bounds = array<i64: 16, 256>}, {pipeline_mode = #tpu.pipeline_mode<synchronous>, transform_indices = @transform_1, window_bounds = array<i64: 256, 256>}, {pipeline_mode = #tpu.pipeline_mode<synchronous>, transform_indices = @transform_2, window_bounds = array<i64: 1, 256>}, {transform_indices = @transform_3, window_bounds = array<i64: 16, 256>}]} {
    %c0 = arith.constant 0 : index
    %c0_0 = arith.constant 0 : index
    %0 = vector.load %arg1[%c0, %c0_0] : memref<16x256xf32, #tpu.memory_space<vmem>>, vector<16x256xf32>
    %c0_1 = arith.constant 0 : index
    %c0_2 = arith.constant 0 : index
    %1 = vector.load %arg2[%c0_1, %c0_2] : memref<256x256xf32, #tpu.memory_space<vmem>>, vector<256x256xf32>
    %cst = arith.constant dense<0.000000e+00> : vector<16x256xf32>
    %2 = tpu.matmul %0, %1, %cst {dimension_numbers = #tpu.dot_dimension_numbers<[1], [0], [0], [1], [0, 0, 1, 1], [], []>} : vector<16x256xf32>, vector<256x256xf32>, vector<16x256xf32> -> vector<16x256xf32>
    %c0_3 = arith.constant 0 : index
    %c0_4 = arith.constant 0 : index
    %3 = vector.load %arg3[%c0_3, %c0_4] : memref<1x256xf32, #tpu.memory_space<vmem>>, vector<1x256xf32>
    %4 = vector.broadcast %3 : vector<1x256xf32> to vector<16x256xf32>
    %5 = arith.addf %2, %4 : vector<16x256xf32>
    %c0_5 = arith.constant 0 : index
    %c0_6 = arith.constant 0 : index
    %6 = vector.load %arg4[%c0_5, %c0_6] : memref<16x256xf32, #tpu.memory_space<vmem>>, vector<16x256xf32>
    tpu.vector_store %arg4[%c0_5, %c0_6], %5 {strides = array<i32>} : memref<16x256xf32, #tpu.memory_space<vmem>>, vector<16x256xf32>,
    return
  }
  func.func @transform_0(%arg0: i32) -> (i32, i32) {
    %c0_i32 = arith.constant 0 : i32
    %c0_i32_0 = arith.constant 0 : i32
    return %arg0, %c0_i32 : i32, i32
  }
  func.func @transform_1(%arg0: i32) -> (i32, i32) {
    %c0_i32 = arith.constant 0 : i32
    %c0_i32_0 = arith.constant 0 : i32
    %c0_i32_1 = arith.constant 0 : i32
    return %c0_i32, %c0_i32_0 : i32, i32
  }
  func.func @transform_2(%arg0: i32) -> (i32, i32) {
    %c0_i32 = arith.constant 0 : i32
    %c0_i32_0 = arith.constant 0 : i32
    %c0_i32_1 = arith.constant 0 : i32
    return %c0_i32, %c0_i32_0 : i32, i32
  }
  func.func @transform_3(%arg0: i32) -> (i32, i32) {
    %c0_i32 = arith.constant 0 : i32
    %c0_i32_0 = arith.constant 0 : i32
    return %arg0, %c0_i32 : i32, i32
  }
}

</mosaic_0001>

<bundles_post_ra>
// kernel: tpu_custom_call.1
= control target key start
LH: loop header
LB: loop body
LE: loop exit
PB: predicated region body
PF: predicated region fallthrough
CT: control target
= control target key end

     0   :  { %8 = vsyncpa [#allocation3], 0  ;;  %s405_s0 = inlined_call_operand.hbm [shape: f32[16,256], index: 0, kind: input, shape index: {}]   ;;  %s406_s1 = inlined_call_operand.hbm [shape: f32[256,256], index: 1, kind: input, shape index: {}]   ;;  %s407_s2 = inlined_call_operand.hbm [shape: f32[1,256], index: 2, kind: input, shape index: {}]   ;;  %s408_s3 = inlined_call_operand.hbm [shape: f32[16,256], index: 3, kind: output, shape index: {}]  }
   0x1   :  { %9 = vsyncpa [#allocation6], 0 }
   0x2   :  { %10 = vsyncpa [#allocation4], 0  ;;  %s28_s14 = sshll.u32 %s406_s1, 4  ;;  %s358_s15 = smov [#allocation5]   ;;  %s29_s14 = int_to_ptr.hbm [resolvable:$true] %s28_s14 }
   0x3   :  { %s30_s16 = sshll.u32 %s358_s15, 4  ;;  %s15_s19 = sshll.u32 %s405_s0, 4  ;;  %s31_s16 = int_to_ptr.vmem [resolvable:$true] %s30_s16  ;;  %s16_s19 = int_to_ptr.hbm [resolvable:$true] %s15_s19 }
   0x4   :  { %s359_s20 = smov 256   ;;  %s360_s21 = smov 16  }
   0x5   :  { %36 = dma.hbm_to_vmem [thread:$0]  %s29_s14, 8192, %s31_s16, [#allocation6], %s359_s20, %s359_s20, %s360_s21  }
   0x6   :  { %s361_s22 = smov [#allocation2]   ;;  %s42_s1 = sshll.u32 %s407_s2, 4  ;;  %s43_s1 = int_to_ptr.hbm [resolvable:$true] %s42_s1 }
   0x7   :  { %s17_s23 = sshll.u32 %s361_s22, 4  ;;  %s362_s0 = smov [#allocation7]   ;;  %s18_s23 = int_to_ptr.vmem [resolvable:$true] %s17_s23 }
   0x8   :  { %23 = dma.hbm_to_vmem [thread:$0]  %s16_s19, 512, %s18_s23, [#allocation3], %s359_s20, %s359_s20, %s360_s21  }
   0x9   :  { %s44_s26 = sshll.u32 %s362_s0, 4  ;;  %s45_s26 = int_to_ptr.vmem [resolvable:$true] %s44_s26 }
   0xa   :  { %47 = dma.hbm_to_vmem [thread:$0]  %s43_s1, 32, %s45_s26, [#allocation6]  }
   0xb   :  { %352 = dma.done.wait [#allocation3], 512  }
   0xc   :  { %353 = vsyncadd [#allocation3], 4294966784 }
   0xd   :  { %354 = dma.done.wait [#allocation6], 8224  }
   0xe   :  { %355 = vsyncadd [#allocation6], 4294959072  ;;  %v95_v0 = vld [vmem:[#allocation5 + $0xf8] sm:$0xff]  ;;  %v93_v1 = vld [vmem:[#allocation5 + $0xe8] sm:$0xff]  ;;  %s363_s2 = smov [#allocation8]   ;;  %s236_s30 = sshll.u32 %s408_s3, 4  ;;  %s237_s30 = int_to_ptr.hbm [resolvable:$true] %s236_s30 }
   0xf   :  { %v127_v2 = vld [vmem:[#allocation5 + $0x1f8] sm:$0xff]  ;;  %180 = vmatpush.msra.mxu2 %v95_v0  ;;  %v125_v3 = vld [vmem:[#allocation5 + $0x1e8] sm:$0xff]  ;;  %v94_v4 = vld [vmem:[#allocation5 + $0xf0] sm:$0xff]  ;;  %s234_s27 = sshll.u32 %s363_s2, 4  ;;  %s235_s27 = int_to_ptr.vmem [resolvable:$true] %s234_s27 }
  0x10   :  { %203 = vmatpush.msra.mxu3 %v127_v2  ;;  %v91_v5 = vld [vmem:[#allocation5 + $0xd8] sm:$0xff]  ;;  %134 = vmatpush.msra.mxu0 %v94_v4  ;;  %v92_v7 = vld [vmem:[#allocation5 + $0xe0] sm:$0xff]  ;;  %v89_v8 = vld [vmem:[#allocation5 + $0xc8] sm:$0xff] }
  0x11   :  { %v123_v6 = vld [vmem:[#allocation5 + $0x1d8] sm:$0xff]  ;;  %181 = vmatpush.msra.mxu2 %v93_v1  ;;  %v126_v9 = vld [vmem:[#allocation5 + $0x1f0] sm:$0xff]  ;;  %v121_v10 = vld [vmem:[#allocation5 + $0x1c8] sm:$0xff] }
  0x12   :  { %204 = vmatpush.msra.mxu3 %v125_v3  ;;  %135 = vmatpush.msra.mxu0 %v92_v7  ;;  %v90_v11 = vld [vmem:[#allocation5 + $0xd0] sm:$0xff]  ;;  %v124_v12 = vld [vmem:[#allocation5 + $0x1e0] sm:$0xff]  ;;  %v87_v15 = vld [vmem:[#allocation5 + $0xb8] sm:$0xff] }
  0x13   :  { %157 = vmatpush.msra.mxu1 %v126_v9  ;;  %182 = vmatpush.msra.mxu2 %v91_v5  ;;  %v88_v13 = vld [vmem:[#allocation5 + $0xc0] sm:$0xff]  ;;  %v122_v14 = vld [vmem:[#allocation5 + $0x1d0] sm:$0xff]  ;;  %v119_v16 = vld [vmem:[#allocation5 + $0x1b8] sm:$0xff] }
  0x14   :  { %205 = vmatpush.msra.mxu3 %v123_v6  ;;  %136 = vmatpush.msra.mxu0 %v90_v11  ;;  %v86_v17 = vld [vmem:[#allocation5 + $0xb0] sm:$0xff]  ;;  %v120_v18 = vld [vmem:[#allocation5 + $0x1c0] sm:$0xff]  ;;  %v85_v19 = vld [vmem:[#allocation5 + $0xa8] sm:$0xff] }
  0x15   :  { %158 = vmatpush.msra.mxu1 %v124_v12  ;;  %183 = vmatpush.msra.mxu2 %v89_v8  ;;  %v117_v20 = vld [vmem:[#allocation5 + $0x1a8] sm:$0xff]  ;;  %v84_v21 = vld [vmem:[#allocation5 + $0xa0] sm:$0xff]  ;;  %v118_v22 = vld [vmem:[#allocation5 + $0x1b0] sm:$0xff] }
  0x16   :  { %206 = vmatpush.msra.mxu3 %v121_v10  ;;  %137 = vmatpush.msra.mxu0 %v88_v13  ;;  %v83_v23 = vld [vmem:[#allocation5 + $0x98] sm:$0xff]  ;;  %v82_v25 = vld [vmem:[#allocation5 + $0x90] sm:$0xff]  ;;  %v116_v26 = vld [vmem:[#allocation5 + $0x1a0] sm:$0xff] }
  0x17   :  { %159 = vmatpush.msra.mxu1 %v122_v14  ;;  %184 = vmatpush.msra.mxu2 %v87_v15  ;;  %v115_v24 = vld [vmem:[#allocation5 + $0x198] sm:$0xff]  ;;  %v81_v27 = vld [vmem:[#allocation5 + $0x88] sm:$0xff]  ;;  %v80_v29 = vld [vmem:[#allocation5 + $0x80] sm:$0xff] }
  0x18   :  { %207 = vmatpush.msra.mxu3 %v119_v16  ;;  %138 = vmatpush.msra.mxu0 %v86_v17  ;;  %v113_v28 = vld [vmem:[#allocation5 + $0x188] sm:$0xff]  ;;  %v114_v30 = vld [vmem:[#allocation5 + $0x190] sm:$0xff]  ;;  %v79_v31 = vld [vmem:[#allocation5 + $0x78] sm:$0xff] }
  0x19   :  { %160 = vmatpush.msra.mxu1 %v120_v18  ;;  %185 = vmatpush.msra.mxu2 %v85_v19  ;;  %v111_v32 = vld [vmem:[#allocation5 + $0x178] sm:$0xff]  ;;  %v78_v33 = vld [vmem:[#allocation5 + $0x70] sm:$0xff]  ;;  %v112_v34 = vld [vmem:[#allocation5 + $0x180] sm:$0xff] }
  0x1a   :  { %208 = vmatpush.msra.mxu3 %v117_v20  ;;  %139 = vmatpush.msra.mxu0 %v84_v21  ;;  %v77_v35 = vld [vmem:[#allocation5 + $0x68] sm:$0xff]  ;;  %v76_v37 = vld [vmem:[#allocation5 + $0x60] sm:$0xff]  ;;  %v110_v38 = vld [vmem:[#allocation5 + $0x170] sm:$0xff] }
  0x1b   :  { %161 = vmatpush.msra.mxu1 %v118_v22  ;;  %186 = vmatpush.msra.mxu2 %v83_v23  ;;  %v109_v36 = vld [vmem:[#allocation5 + $0x168] sm:$0xff]  ;;  %v75_v39 = vld [vmem:[#allocation5 + $0x58] sm:$0xff]  ;;  %v74_v41 = vld [vmem:[#allocation5 + $0x50] sm:$0xff] }
  0x1c   :  { %209 = vmatpush.msra.mxu3 %v115_v24  ;;  %140 = vmatpush.msra.mxu0 %v82_v25  ;;  %v107_v40 = vld [vmem:[#allocation5 + $0x158] sm:$0xff]  ;;  %v108_v42 = vld [vmem:[#allocation5 + $0x160] sm:$0xff]  ;;  %v73_v43 = vld [vmem:[#allocation5 + $0x48] sm:$0xff] }
  0x1d   :  { %162 = vmatpush.msra.mxu1 %v116_v26  ;;  %187 = vmatpush.msra.mxu2 %v81_v27  ;;  %v105_v44 = vld [vmem:[#allocation5 + $0x148] sm:$0xff]  ;;  %v72_v45 = vld [vmem:[#allocation5 + $0x40] sm:$0xff]  ;;  %v106_v46 = vld [vmem:[#allocation5 + $0x150] sm:$0xff] }
  0x1e   :  { %210 = vmatpush.msra.mxu3 %v113_v28  ;;  %141 = vmatpush.msra.mxu0 %v80_v29  ;;  %v71_v47 = vld [vmem:[#allocation5 + $0x38] sm:$0xff]  ;;  %v70_v49 = vld [vmem:[#allocation5 + $0x30] sm:$0xff]  ;;  %v104_v50 = vld [vmem:[#allocation5 + $0x140] sm:$0xff] }
  0x1f   :  { %163 = vmatpush.msra.mxu1 %v114_v30  ;;  %188 = vmatpush.msra.mxu2 %v79_v31  ;;  %v103_v48 = vld [vmem:[#allocation5 + $0x138] sm:$0xff]  ;;  %v69_v51 = vld [vmem:[#allocation5 + $0x28] sm:$0xff]  ;;  %v68_v53 = vld [vmem:[#allocation5 + $0x20] sm:$0xff] }
  0x20   :  { %211 = vmatpush.msra.mxu3 %v111_v32  ;;  %142 = vmatpush.msra.mxu0 %v78_v33  ;;  %v101_v52 = vld [vmem:[#allocation5 + $0x128] sm:$0xff]  ;;  %v102_v54 = vld [vmem:[#allocation5 + $0x130] sm:$0xff]  ;;  %v67_v55 = vld [vmem:[#allocation5 + $0x18] sm:$0xff] }
  0x21   :  { %164 = vmatpush.msra.mxu1 %v112_v34  ;;  %189 = vmatpush.msra.mxu2 %v77_v35  ;;  %v99_v56 = vld [vmem:[#allocation5 + $0x118] sm:$0xff]  ;;  %v66_v57 = vld [vmem:[#allocation5 + $0x10] sm:$0xff]  ;;  %v100_v58 = vld [vmem:[#allocation5 + $0x120] sm:$0xff] }
  0x22   :  { %212 = vmatpush.msra.mxu3 %v109_v36  ;;  %143 = vmatpush.msra.mxu0 %v76_v37  ;;  %v65_v59 = vld [vmem:[#allocation5 + $0x8] sm:$0xff]  ;;  %v60_v61 = vld [vmem:[#allocation2] sm:$0xff]  ;;  %v98_v0 = vld [vmem:[#allocation5 + $0x110] sm:$0xff] }
  0x23   :  { %165 = vmatpush.msra.mxu1 %v110_v38  ;;  %190 = vmatpush.msra.mxu2 %v75_v39  ;;  %v97_v60 = vld [vmem:[#allocation5 + $0x108] sm:$0xff]  ;;  %v64_v63 = vld [vmem:[#allocation5] sm:$0xff]  ;;  %v62_v2 = vld [vmem:[#allocation2 + $0x10] sm:$0xff] }
  0x24   :  { %213 = vmatpush.msra.mxu3 %v107_v40  ;;  %144 = vmatpush.msra.mxu0 %v74_v41  ;;  %v61_v62 = vld [vmem:[#allocation2 + $0x8] sm:$0xff]  ;;  %v96_v1 = vld [vmem:[#allocation5 + $0x100] sm:$0xff]  ;;  %v63_v3 = vld [vmem:[#allocation2 + $0x18] sm:$0xff] }
  0x25   :  { %166 = vmatpush.msra.mxu1 %v108_v42  ;;  %191 = vmatpush.msra.mxu2 %v73_v43  ;;  %v128_v4 = vld [vmem:[#allocation7] sm:$0x3] }
  0x26   :  { %214 = vmatpush.msra.mxu3 %v105_v44  ;;  %145 = vmatpush.msra.mxu0 %v72_v45  ;;  %v130_v5 = vperm.slane %v128_v4, 0  ;;  %v131_v8 = vperm.slane %v128_v4, 1 }
  0x27   :  { %167 = vmatpush.msra.mxu1 %v106_v46  ;;  %192 = vmatpush.msra.mxu2 %v71_v47 }
  0x28   :  { %215 = vmatpush.msra.mxu3 %v103_v48  ;;  %146 = vmatpush.msra.mxu0 %v70_v49 }
  0x29   :  { %168 = vmatpush.msra.mxu1 %v104_v50  ;;  %193 = vmatpush.msra.mxu2 %v69_v51 }
  0x2a   :  { %216 = vmatpush.msra.mxu3 %v101_v52  ;;  %147 = vmatpush.msra.mxu0 %v68_v53 }
  0x2b   :  { %169 = vmatpush.msra.mxu1 %v102_v54  ;;  %194 = vmatpush.msra.mxu2 %v67_v55 }
  0x2c   :  { %217 = vmatpush.msra.mxu3 %v99_v56  ;;  %148 = vmatpush.msra.mxu0 %v66_v57 }
  0x2d   :  { %170 = vmatpush.msra.mxu1 %v100_v58  ;;  %195 = vmatpush.msra.mxu2 %v65_v59 }
  0x2e   :  { %218 = vmatpush.msra.mxu3 %v97_v60  ;;  %196 = vmatmul.f32.vlgmr.msra.gmra.mxu2 %v60_v61 }
  0x2f   :  { %219 = vmatmul.f32.vlgmr.msra.gmra.mxu3 %v61_v62  ;;  %149 = vmatpush.msra.mxu0 %v64_v63 }
  0x30   :  { %171 = vmatpush.msra.mxu1 %v98_v0  ;;  %150 = vmatmul.f32.vlgmr.msra.gmra.mxu0 %v60_v61 }
  0x32   :  { %172 = vmatpush.msra.mxu1 %v96_v1 }
  0x33   :  { %173 = vmatmul.f32.vlgmr.msra.gmra.mxu1 %v61_v62 }
  0x36   :  { %199 = vmatmul.f32.gmra.mxu2 %v62_v2 }
  0x37   :  { %222 = vmatmul.f32.gmra.mxu3 %v63_v3 }
  0x38   :  { %153 = vmatmul.f32.gmra.mxu0 %v62_v2 }
  0x3b   :  { %176 = vmatmul.f32.gmra.mxu1 %v63_v3 }
  0xad   :  { %v151_v6 = vpop.f32.mrf.mxu0 }
  0xae   :  { %v152_v7 = vadd.f32 %v151_v6, %v130_v5 }
  0xb0   :  { %v174_v9 = vpop.f32.mrf.mxu1 }
  0xb1   :  { %v175_v10 = vadd.f32 %v174_v9, %v152_v7  ;;  %v197_v11 = vpop.f32.mrf.mxu2 }
  0xb2   :  { %v220_v12 = vpop.f32.mrf.mxu3  ;;  %v198_v13 = vadd.f32 %v197_v11, %v131_v8 }
  0xb3   :  { %226 = vst [vmem:[#allocation8] sm:$0xff] %v175_v10 }
  0xb4   :  { %v221_v14 = vadd.f32 %v220_v12, %v198_v13 }
  0xb5   :  { %v154_v15 = vpop.f32.mrf.mxu0 }
  0xb6   :  { %227 = vst [vmem:[#allocation8 + $0x8] sm:$0xff] %v221_v14  ;;  %v155_v16 = vadd.f32 %v154_v15, %v130_v5 }
  0xb8   :  { %v177_v17 = vpop.f32.mrf.mxu1 }
  0xb9   :  { %v178_v18 = vadd.f32 %v177_v17, %v155_v16  ;;  %v200_v19 = vpop.f32.mrf.mxu2 }
  0xba   :  { %v223_v20 = vpop.f32.mrf.mxu3  ;;  %v201_v21 = vadd.f32 %v200_v19, %v131_v8 }
  0xbb   :  { %228 = vst [vmem:[#allocation8 + $0x10] sm:$0xff] %v178_v18 }
  0xbc   :  { %v224_v22 = vadd.f32 %v223_v20, %v201_v21 }
  0xbe   :  { %229 = vst [vmem:[#allocation8 + $0x18] sm:$0xff] %v224_v22 }
  0xbf   :  { %242 = dma.vmem_to_hbm [thread:$0]  %s235_s27, 512, %s237_s30, [#allocation4], %s359_s20, %s359_s20, %s360_s21  }
  0xc0   :  { %356 = dma.done.wait [#allocation4], 512  }
  0xc1   :  { %357 = vsyncadd [#allocation4], 4294966784 }
  0xc2   :  { %247 = vsyncpa [#allocation3], 1 }
  0xc3   :  { %248 = vsyncpa [#allocation6], 1 }
  0xc4   :  { %249 = vsyncpa [#allocation4], 1 }

</bundles_post_ra>
